<compile_context>
chip_gen: v5e
topology: v5e:2x2
jax: 0.10.0
libtpu: 0.0.40
codegen_flags: <defaults>
</compile_context>

<pallas_src>
import functools

import jax
import jax.numpy as jnp
from jax import lax
from jax.experimental import pallas as pl
from jax.experimental.pallas import tpu as pltpu


# ---------------------------------------------------------------------------
# Helpers
# ---------------------------------------------------------------------------
def _layer_norm(x, g, b, eps=1e-5):
    # matches torch.nn.LayerNorm over last dim (biased variance, eps inside sqrt)
    mean = jnp.mean(x, axis=-1, keepdims=True)
    var = jnp.mean((x - mean) ** 2, axis=-1, keepdims=True)
    return (x - mean) * lax.rsqrt(var + eps) * g + b


# ---------------------------------------------------------------------------
# Kernel (one grid step = one batch-block x one transformer block)
# ---------------------------------------------------------------------------
def transformer_kernel(
    x_ref,         # (Bb, T, D_in)            f32
    emb_w_ref,     # (D_in, E)                bf16
    posb_ref,      # (Bb*T, E)                f32 (emb bias + pos table, tiled over Bb)
    ln1_g_ref,     # (1, 1, E)                f32
    ln1_b_ref,     # (1, 1, E)                f32
    qkv_w_ref,     # (1, E, 3*n_heads*H)      bf16
    ln2_g_ref,     # (1, 1, E)                f32
    ln2_b_ref,     # (1, 1, E)                f32
    w1_ref,        # (1, E, 4E)               bf16
    b1_ref,        # (1, 1, 4E)               f32
    w2_ref,        # (1, 4E, E)               bf16
    b2_ref,        # (1, 1, E)                f32
    head_w_ref,    # (E, out_pad)             bf16 (zero padded)
    head_b_ref,    # (1, out_pad)             f32  (zero padded)
    o_ref,         # (Bb, T, out_pad)         f32
    y_scr,         # (Bb*T, E)                f32 VMEM scratch, resident across blocks
    *, block_b, seq_len, n_heads, head_size, out_pad,
):
    f32 = jnp.float32
    bf16 = jnp.bfloat16
    N = block_b * seq_len
    H = head_size
    nhH = n_heads * H

    blk = pl.program_id(1)
    n_blk = pl.num_programs(1)

    # ---- Prologue (first block only): embedding + positional embedding ----
    @pl.when(blk == 0)
    def _():
        xf = x_ref[...].reshape(N, x_ref.shape[-1]).astype(bf16)
        y0 = jnp.dot(xf, emb_w_ref[...], preferred_element_type=f32)
        y_scr[...] = y0 + posb_ref[...]

    y = y_scr[...]  # (N, E) f32

    # ---- Multi-head causal attention (heads are summed) + residual ----
    h = _layer_norm(y, ln1_g_ref[0], ln1_b_ref[0])
    # fused Q/K/V projection: one lane-dense matmul (E -> 3*n_heads*H)
    qkv = jnp.dot(h.astype(bf16), qkv_w_ref[0], preferred_element_type=f32)
    qkv = qkv.reshape(block_b, seq_len, 3 * nhH).astype(bf16)  # single cast for all heads
    q_all = qkv[..., 0:nhH]
    k_all = qkv[..., nhH:2 * nhH]
    v_all = qkv[..., 2 * nhH:3 * nhH]

    # additive causal bias, built once per grid step
    row = lax.broadcasted_iota(jnp.int32, (seq_len, seq_len), 0)
    col = lax.broadcasted_iota(jnp.int32, (seq_len, seq_len), 1)
    bias = jnp.where(col <= row, 0.0, -1e30).astype(f32)[None]  # (1, T, T)

    scale = H ** (-0.5)
    mh = jnp.zeros((block_b, seq_len, H), f32)
    for hd in range(n_heads):  # n_heads small & static -> unrolled
        lo = hd * H
        Qh = q_all[..., lo:lo + H]
        Kh = k_all[..., lo:lo + H]
        Vh = v_all[..., lo:lo + H]
        # batched Q.K^T without materializing a transpose
        A = jnp.einsum("bqh,bkh->bqk", Qh, Kh, preferred_element_type=f32) * scale + bias
        m = jnp.max(A, axis=-1, keepdims=True)
        e = jnp.exp(A - m)
        s = jnp.sum(e, axis=-1, keepdims=True)
        P = (e * pl.reciprocal(s, approx=True)).astype(bf16)
        mh = mh + jnp.einsum("bqk,bkh->bqh", P, Vh, preferred_element_type=f32)
    # TODO(synk): dropout is identity in eval mode (no RNG applied here).

    y = y + mh.reshape(N, H)

    # ---- norm2 -> FFN + residual (residual is the normalized value, as in ref) ----
    h2 = _layer_norm(y, ln2_g_ref[0], ln2_b_ref[0])
    f = jnp.dot(h2.astype(bf16), w1_ref[0], preferred_element_type=f32) + b1_ref[0]
    f = jnp.maximum(f, 0.0)
    g = jnp.dot(f.astype(bf16), w2_ref[0], preferred_element_type=f32) + b2_ref[0]
    y_new = g + h2
    y_scr[...] = y_new

    # ---- Epilogue (last block only): output head + sigmoid (lane-dense store) ----
    @pl.when(blk == n_blk - 1)
    def _():
        logits = jnp.dot(y_new.astype(bf16), head_w_ref[...],
                         preferred_element_type=f32) + head_b_ref[...]
        o_ref[...] = jax.nn.sigmoid(logits).reshape(block_b, seq_len, out_pad)


# ---------------------------------------------------------------------------
# Wrapper
# ---------------------------------------------------------------------------
def transformer_forward(x, params, *, n_blocks, n_heads, head_size, block_b=None):
    B, T, D_in = x.shape
    E = params["emb_w"].shape[1]
    H = head_size
    F = params["w1"].shape[-1]
    assert H == E, "residual add requires head_size == n_embedding"

    if block_b is None:
        block_b = min(B, 8)
    while B % block_b:
        block_b -= 1
    grid_b = B // block_b

    bf16 = jnp.bfloat16
    f32 = jnp.float32
    nhH = n_heads * H

    # Fuse per-head Q/K/V weights into one (n_blocks, E, 3*n_heads*H) matrix.
    def _fuse(w):  # (n_blocks, n_heads, E, H) -> (n_blocks, E, n_heads*H)
        return jnp.transpose(w, (0, 2, 1, 3)).reshape(n_blocks, E, nhH)

    qkv_w = jnp.concatenate(
        [_fuse(params["qw"]), _fuse(params["kw"]), _fuse(params["vw"])], axis=-1
    ).astype(bf16)

    # Lane-pad output head to a multiple of 128 for dense (unmasked) stores.
    out_pad = max(128, ((D_in + 127) // 128) * 128)
    head_w = jnp.zeros((E, out_pad), f32).at[:, :D_in].set(params["head_w"]).astype(bf16)
    head_b = jnp.zeros((1, out_pad), f32).at[:, :D_in].set(params["head_b"])

    emb_w = params["emb_w"].astype(bf16)
    # Pre-fuse embedding bias with the positional table and tile over the batch block.
    posb = jnp.tile(
        (params["pos_emb"][:T] + params["emb_b"]).astype(f32), (block_b, 1)
    )  # (Bb*T, E)

    ln1_g = params["ln1_g"].reshape(n_blocks, 1, E).astype(f32)
    ln1_b = params["ln1_b"].reshape(n_blocks, 1, E).astype(f32)
    ln2_g = params["ln2_g"].reshape(n_blocks, 1, E).astype(f32)
    ln2_b = params["ln2_b"].reshape(n_blocks, 1, E).astype(f32)
    w1 = params["w1"].astype(bf16)
    b1 = params["b1"].reshape(n_blocks, 1, F).astype(f32)
    w2 = params["w2"].astype(bf16)
    b2 = params["b2"].reshape(n_blocks, 1, E).astype(f32)

    def _invariant(a):  # resident across the whole grid
        return pl.BlockSpec(a.shape, lambda b, l, _nd=a.ndim: (0,) * _nd)

    def _per_block(a):  # streamed along the transformer-block grid axis
        return pl.BlockSpec((1,) + tuple(a.shape[1:]),
                            lambda b, l, _nd=a.ndim: (l,) + (0,) * (_nd - 1))

    inputs = [x, emb_w, posb,
              ln1_g, ln1_b, qkv_w, ln2_g, ln2_b,
              w1, b1, w2, b2, head_w, head_b]
    in_specs = [
        pl.BlockSpec((block_b, T, D_in), lambda b, l: (b, 0, 0)),
        _invariant(emb_w), _invariant(posb),
        _per_block(ln1_g), _per_block(ln1_b), _per_block(qkv_w),
        _per_block(ln2_g), _per_block(ln2_b),
        _per_block(w1), _per_block(b1), _per_block(w2), _per_block(b2),
        _invariant(head_w), _invariant(head_b),
    ]

    kernel = functools.partial(
        transformer_kernel,
        block_b=block_b, seq_len=T, n_heads=n_heads, head_size=H, out_pad=out_pad,
    )

    # VMEM budget: 2x double-buffering of per-step inputs + output tile + scratch + headroom.
    def _nbytes(a):
        return int(a.size) * a.dtype.itemsize

    streamed = [ln1_g, ln1_b, qkv_w, ln2_g, ln2_b, w1, b1, w2, b2]
    resident = [emb_w, posb, head_w, head_b]
    per_step = (sum(_nbytes(a) // n_blocks for a in streamed)
                + sum(_nbytes(a) for a in resident)
                + _nbytes(x) // grid_b
                + block_b * T * out_pad * 4)
    vmem_limit = int(min(48 << 20, max(32 << 20,
                                       2 * per_step + block_b * T * E * 4 + (4 << 20))))

    out = pl.pallas_call(
        kernel,
        out_shape=jax.ShapeDtypeStruct((B, T, out_pad), f32),
        grid=(grid_b, n_blocks),
        in_specs=in_specs,
        out_specs=pl.BlockSpec((block_b, T, out_pad), lambda b, l: (b, 0, 0)),
        scratch_shapes=[pltpu.VMEM((block_b * T, E), f32)],
        compiler_params=pltpu.CompilerParams(
            dimension_semantics=("parallel", "arbitrary"),
            vmem_limit_bytes=vmem_limit,
        ),
    )(*inputs)
    return out[..., :D_in]


# ---------------------------------------------------------------------------
# Pure-JAX reference (mirrors the PyTorch forward, with the same bf16 casts)
# ---------------------------------------------------------------------------
def reference_forward(x, params, *, n_blocks, n_heads, head_size):
    bf16, f32 = jnp.bfloat16, jnp.float32
    B, T, _ = x.shape

    def mm(a, w):
        return jnp.einsum("bte,ef->btf", a.astype(bf16), w.astype(bf16),
                          preferred_element_type=f32)

    y = mm(x, params["emb_w"]) + params["emb_b"] + params["pos_emb"][:T]
    causal = jnp.tril(jnp.ones((T, T), dtype=bool))
    scale = head_size ** (-0.5)
    for blk in range(n_blocks):
        h = _layer_norm(y, params["ln1_g"][blk], params["ln1_b"][blk])
        mh = jnp.zeros((B, T, head_size), f32)
        for hd in range(n_heads):
            Q = mm(h, params["qw"][blk, hd])
            K = mm(h, params["kw"][blk, hd])
            V = mm(h, params["vw"][blk, hd])
            A = jnp.einsum("bqh,bkh->bqk", Q.astype(bf16), K.astype(bf16),
                           preferred_element_type=f32) * scale
            A = jnp.where(causal, A, -1e30)
            A = jax.nn.softmax(A, axis=-1)
            mh = mh + jnp.einsum("bqk,bkh->bqh", A.astype(bf16), V.astype(bf16),
                                 preferred_element_type=f32)
        y = mh + y
        h2 = _layer_norm(y, params["ln2_g"][blk], params["ln2_b"][blk])
        f = jnp.maximum(mm(h2, params["w1"][blk]) + params["b1"][blk], 0.0)
        g = mm(f, params["w2"][blk]) + params["b2"][blk]
        y = g + h2
    out = mm(y, params["head_w"]) + params["head_b"]
    return jax.nn.sigmoid(out)


# ---------------------------------------------------------------------------
# Deterministic parameter init + demo
# ---------------------------------------------------------------------------
def init_params(key, *, input_size, n, n_embedding, n_blocks, n_heads, head_size):
    E, H, F = n_embedding, head_size, 4 * n_embedding
    ks = jax.random.split(key, 8)
    nrm = lambda k, s: (0.02 * jax.random.normal(k, s)).astype(jnp.float32)
    return {
        "emb_w": nrm(ks[0], (input_size, E)),
        "emb_b": jnp.zeros((1, E), jnp.float32),
        "pos_emb": nrm(ks[1], (n, E)),
        "ln1_g": jnp.ones((n_blocks, E), jnp.float32),
        "ln1_b": jnp.zeros((n_blocks, E), jnp.float32),
        "qw": nrm(ks[2], (n_blocks, n_heads, E, H)),
        "kw": nrm(ks[3], (n_blocks, n_heads, E, H)),
        "vw": nrm(ks[4], (n_blocks, n_heads, E, H)),
        "ln2_g": jnp.ones((n_blocks, E), jnp.float32),
        "ln2_b": jnp.zeros((n_blocks, E), jnp.float32),
        "w1": nrm(ks[5], (n_blocks, E, F)),
        "b1": jnp.zeros((n_blocks, F), jnp.float32),
        "w2": nrm(ks[6], (n_blocks, F, E)),
        "b2": jnp.zeros((n_blocks, E), jnp.float32),
        "head_w": nrm(ks[7], (E, input_size)),
        "head_b": jnp.zeros((1, input_size), jnp.float32),
    }


if __name__ == "__main__":
    # Small config consistent with the module's constructor
    input_size = 4      # feature dim of x
    n = 8               # max sequence length (mask / position table size)
    n_embedding = 32
    n_blocks = 2
    n_heads = 2
    head_size = 32      # must equal n_embedding (heads summed, then residual-added)
    B, T = 2, 8

    key = jax.random.PRNGKey(0)
    kx, kp = jax.random.split(key)
    x = jax.random.normal(kx, (B, T, input_size), dtype=jnp.float32)
    params = init_params(
        kp, input_size=input_size, n=n, n_embedding=n_embedding,
        n_blocks=n_blocks, n_heads=n_heads, head_size=head_size,
    )

    out = transformer_forward(
        x, params, n_blocks=n_blocks, n_heads=n_heads, head_size=head_size
    )
    out = jax.block_until_ready(out)

    ref = reference_forward(
        x, params, n_blocks=n_blocks, n_heads=n_heads, head_size=head_size
    )
    assert out.shape == (B, T, input_size)
    assert jnp.allclose(out, ref, atol=5e-3, rtol=5e-3), "mismatch vs reference"

    print("KERNEL_OK")
</pallas_src>

<mosaic_0001>
module attributes {stable_mosaic.version = 11 : i64} {
  func.func @transformer_kernel(%arg0: i32, %arg1: i32, %arg2: memref<2x8x4xf32, #tpu.memory_space<vmem>>, %arg3: memref<4x32xbf16, #tpu.memory_space<vmem>>, %arg4: memref<16x32xf32, #tpu.memory_space<vmem>>, %arg5: memref<1x1x32xf32, #tpu.memory_space<vmem>>, %arg6: memref<1x1x32xf32, #tpu.memory_space<vmem>>, %arg7: memref<1x32x192xbf16, #tpu.memory_space<vmem>>, %arg8: memref<1x1x32xf32, #tpu.memory_space<vmem>>, %arg9: memref<1x1x32xf32, #tpu.memory_space<vmem>>, %arg10: memref<1x32x128xbf16, #tpu.memory_space<vmem>>, %arg11: memref<1x1x128xf32, #tpu.memory_space<vmem>>, %arg12: memref<1x128x32xbf16, #tpu.memory_space<vmem>>, %arg13: memref<1x1x32xf32, #tpu.memory_space<vmem>>, %arg14: memref<32x128xbf16, #tpu.memory_space<vmem>>, %arg15: memref<1x128xf32, #tpu.memory_space<vmem>>, %arg16: memref<2x8x128xf32, #tpu.memory_space<vmem>>, %arg17: memref<16x32xf32, #tpu.memory_space<vmem>>) attributes {dimension_semantics = [#tpu.dimension_semantics<parallel>, #tpu.dimension_semantics<arbitrary>], iteration_bounds = array<i64: 1, 2>, scalar_prefetch = 0 : i64, scratch_operands = 1 : i64, tpu.core_type = #tpu.core_type<tc>, window_params = [{transform_indices = @transform_0, window_bounds = array<i64: 2, 8, 4>}, {pipeline_mode = #tpu.pipeline_mode<synchronous>, transform_indices = @transform_1, window_bounds = array<i64: 4, 32>}, {pipeline_mode = #tpu.pipeline_mode<synchronous>, transform_indices = @transform_2, window_bounds = array<i64: 16, 32>}, {transform_indices = @transform_3, window_bounds = array<i64: 1, 1, 32>}, {transform_indices = @transform_4, window_bounds = array<i64: 1, 1, 32>}, {transform_indices = @transform_5, window_bounds = array<i64: 1, 32, 192>}, {transform_indices = @transform_6, window_bounds = array<i64: 1, 1, 32>}, {transform_indices = @transform_7, window_bounds = array<i64: 1, 1, 32>}, {transform_indices = @transform_8, window_bounds = array<i64: 1, 32, 128>}, {transform_indices = @transform_9, window_bounds = array<i64: 1, 1, 128>}, {transform_indices = @transform_10, window_bounds = array<i64: 1, 128, 32>}, {transform_indices = @transform_11, window_bounds = array<i64: 1, 1, 32>}, {pipeline_mode = #tpu.pipeline_mode<synchronous>, transform_indices = @transform_12, window_bounds = array<i64: 32, 128>}, {pipeline_mode = #tpu.pipeline_mode<synchronous>, transform_indices = @transform_13, window_bounds = array<i64: 1, 128>}, {transform_indices = @transform_14, window_bounds = array<i64: 2, 8, 128>}]} {
    %c0_i32 = arith.constant 0 : i32
    %0 = arith.cmpi eq, %arg1, %c0_i32 : i32
    %1 = arith.extui %0 : i1 to i32
    %c0_i32_0 = arith.constant 0 : i32
    %2 = arith.cmpi ne, %1, %c0_i32_0 : i32
    scf.if %2 {
      %c0_58 = arith.constant 0 : index
      %c0_59 = arith.constant 0 : index
      %c0_60 = arith.constant 0 : index
      %140 = vector.load %arg2[%c0_58, %c0_59, %c0_60] : memref<2x8x4xf32, #tpu.memory_space<vmem>>, vector<2x8x4xf32>
      %141 = vector.shape_cast %140 : vector<2x8x4xf32> to vector<16x4xf32>
      %142 = arith.truncf %141 : vector<16x4xf32> to vector<16x4xbf16>
      %c0_61 = arith.constant 0 : index
      %c0_62 = arith.constant 0 : index
      %143 = vector.load %arg3[%c0_61, %c0_62] : memref<4x32xbf16, #tpu.memory_space<vmem>>, vector<4x32xbf16>
      %cst_63 = arith.constant dense<0.000000e+00> : vector<16x32xf32>
      %144 = tpu.matmul %142, %143, %cst_63 {dimension_numbers = #tpu.dot_dimension_numbers<[1], [0], [0], [1], [0, 0, 1, 1], [], []>} : vector<16x4xbf16>, vector<4x32xbf16>, vector<16x32xf32> -> vector<16x32xf32>
      %c0_64 = arith.constant 0 : index
      %c0_65 = arith.constant 0 : index
      %145 = vector.load %arg4[%c0_64, %c0_65] : memref<16x32xf32, #tpu.memory_space<vmem>>, vector<16x32xf32>
      %146 = arith.addf %144, %145 : vector<16x32xf32>
      %c0_66 = arith.constant 0 : index
      %c0_67 = arith.constant 0 : index
      %147 = vector.load %arg17[%c0_66, %c0_67] : memref<16x32xf32, #tpu.memory_space<vmem>>, vector<16x32xf32>
      tpu.vector_store %arg17[%c0_66, %c0_67], %146 {strides = array<i32>} : memref<16x32xf32, #tpu.memory_space<vmem>>, vector<16x32xf32>,
    } else {
    }
    %c0 = arith.constant 0 : index
    %c0_1 = arith.constant 0 : index
    %3 = vector.load %arg17[%c0, %c0_1] : memref<16x32xf32, #tpu.memory_space<vmem>>, vector<16x32xf32>
    %c0_2 = arith.constant 0 : index
    %c0_3 = arith.constant 0 : index
    %c0_4 = arith.constant 0 : index
    %4 = vector.load %arg5[%c0_2, %c0_3, %c0_4] : memref<1x1x32xf32, #tpu.memory_space<vmem>>, vector<1x1x32xf32>
    %5 = vector.shape_cast %4 : vector<1x1x32xf32> to vector<1x32xf32>
    %c0_5 = arith.constant 0 : index
    %c0_6 = arith.constant 0 : index
    %c0_7 = arith.constant 0 : index
    %6 = vector.load %arg6[%c0_5, %c0_6, %c0_7] : memref<1x1x32xf32, #tpu.memory_space<vmem>>, vector<1x1x32xf32>
    %7 = vector.shape_cast %6 : vector<1x1x32xf32> to vector<1x32xf32>
    %cst = arith.constant dense<0.000000e+00> : vector<16xf32>
    %8 = vector.multi_reduction <add>, %3, %cst [1] : vector<16x32xf32> to vector<16xf32>
    %9 = vector.shape_cast %8 : vector<16xf32> to vector<16x1xf32>
    %cst_8 = arith.constant 3.200000e+01 : f32
    %10 = vector.broadcast %cst_8 : f32 to vector<16x1xf32>
    %11 = arith.divf %9, %10 : vector<16x1xf32>
    %12 = vector.broadcast %11 : vector<16x1xf32> to vector<16x32xf32>
    %13 = arith.subf %3, %12 : vector<16x32xf32>
    %14 = arith.mulf %13, %13 : vector<16x32xf32>
    %cst_9 = arith.constant dense<0.000000e+00> : vector<16xf32>
    %15 = vector.multi_reduction <add>, %14, %cst_9 [1] : vector<16x32xf32> to vector<16xf32>
    %16 = vector.shape_cast %15 : vector<16xf32> to vector<16x1xf32>
    %cst_10 = arith.constant 3.200000e+01 : f32
    %17 = vector.broadcast %cst_10 : f32 to vector<16x1xf32>
    %18 = arith.divf %16, %17 : vector<16x1xf32>
    %19 = vector.broadcast %11 : vector<16x1xf32> to vector<16x32xf32>
    %20 = arith.subf %3, %19 : vector<16x32xf32>
    %cst_11 = arith.constant 9.99999974E-6 : f32
    %21 = vector.broadcast %cst_11 : f32 to vector<16x1xf32>
    %22 = arith.addf %18, %21 : vector<16x1xf32>
    %23 = math.rsqrt %22 : vector<16x1xf32>
    %24 = vector.broadcast %23 : vector<16x1xf32> to vector<16x32xf32>
    %25 = arith.mulf %20, %24 : vector<16x32xf32>
    %26 = vector.broadcast %5 : vector<1x32xf32> to vector<16x32xf32>
    %27 = arith.mulf %25, %26 : vector<16x32xf32>
    %28 = vector.broadcast %7 : vector<1x32xf32> to vector<16x32xf32>
    %29 = arith.addf %27, %28 : vector<16x32xf32>
    %30 = arith.truncf %29 : vector<16x32xf32> to vector<16x32xbf16>
    %c0_12 = arith.constant 0 : index
    %c0_13 = arith.constant 0 : index
    %c0_14 = arith.constant 0 : index
    %31 = vector.load %arg7[%c0_12, %c0_13, %c0_14] : memref<1x32x192xbf16, #tpu.memory_space<vmem>>, vector<1x32x192xbf16>
    %32 = vector.shape_cast %31 : vector<1x32x192xbf16> to vector<32x192xbf16>
    %cst_15 = arith.constant dense<0.000000e+00> : vector<16x192xf32>
    %33 = tpu.matmul %30, %32, %cst_15 {dimension_numbers = #tpu.dot_dimension_numbers<[1], [0], [0], [1], [0, 0, 1, 1], [], []>} : vector<16x32xbf16>, vector<32x192xbf16>, vector<16x192xf32> -> vector<16x192xf32>
    %34 = vector.shape_cast %33 : vector<16x192xf32> to vector<2x8x192xf32>
    %35 = arith.truncf %34 : vector<2x8x192xf32> to vector<2x8x192xbf16>
    %36 = vector.extract_strided_slice %35 {offsets = [0, 0, 0], sizes = [2, 8, 64], strides = [1, 1, 1]} : vector<2x8x192xbf16> to vector<2x8x64xbf16>
    %37 = vector.extract_strided_slice %35 {offsets = [0, 0, 64], sizes = [2, 8, 64], strides = [1, 1, 1]} : vector<2x8x192xbf16> to vector<2x8x64xbf16>
    %38 = vector.extract_strided_slice %35 {offsets = [0, 0, 128], sizes = [2, 8, 64], strides = [1, 1, 1]} : vector<2x8x192xbf16> to vector<2x8x64xbf16>
    %39 = tpu.iota {dimensions = array<i32: 0>} : vector<8x8xi32>
    %40 = tpu.iota {dimensions = array<i32: 1>} : vector<8x8xi32>
    %41 = arith.cmpi sle, %40, %39 : vector<8x8xi32>
    %cst_16 = arith.constant 0.000000e+00 : f32
    %cst_17 = arith.constant -1.000000e+30 : f32
    %42 = vector.broadcast %cst_16 : f32 to vector<8x8xf32>
    %43 = vector.broadcast %cst_17 : f32 to vector<8x8xf32>
    %44 = arith.select %41, %42, %43 : vector<8x8xi1>, vector<8x8xf32>
    %45 = vector.shape_cast %44 : vector<8x8xf32> to vector<1x8x8xf32>
    %cst_18 = arith.constant 0.000000e+00 : f32
    %46 = vector.broadcast %cst_18 : f32 to vector<2x8x32xf32>
    %47 = vector.extract_strided_slice %36 {offsets = [0, 0, 0], sizes = [2, 8, 32], strides = [1, 1, 1]} : vector<2x8x64xbf16> to vector<2x8x32xbf16>
    %48 = vector.extract_strided_slice %37 {offsets = [0, 0, 0], sizes = [2, 8, 32], strides = [1, 1, 1]} : vector<2x8x64xbf16> to vector<2x8x32xbf16>
    %49 = vector.extract_strided_slice %38 {offsets = [0, 0, 0], sizes = [2, 8, 32], strides = [1, 1, 1]} : vector<2x8x64xbf16> to vector<2x8x32xbf16>
    "tpu.trace_start"() <{level = 10 : i32, message = "bqh,bkh->bqk"}> : () -> ()
    %cst_19 = arith.constant dense<0.000000e+00> : vector<2x8x8xf32>
    %50 = tpu.matmul %47, %48, %cst_19 {dimension_numbers = #tpu.dot_dimension_numbers<[2], [2], [1], [1], [0, 0, 0, 1, 1, 1], [0], [0]>} : vector<2x8x32xbf16>, vector<2x8x32xbf16>, vector<2x8x8xf32> -> vector<2x8x8xf32>
    "tpu.trace_stop"() : () -> ()
    %cst_20 = arith.constant 0.176776692 : f32
    %51 = vector.broadcast %cst_20 : f32 to vector<2x8x8xf32>
    %52 = arith.mulf %50, %51 : vector<2x8x8xf32>
    %53 = vector.broadcast %45 : vector<1x8x8xf32> to vector<2x8x8xf32>
    %54 = arith.addf %52, %53 : vector<2x8x8xf32>
    %cst_21 = arith.constant dense<0xFF800000> : vector<2x8xf32>
    %55 = vector.multi_reduction <maximumf>, %54, %cst_21 [2] : vector<2x8x8xf32> to vector<2x8xf32>
    %56 = vector.shape_cast %55 : vector<2x8xf32> to vector<2x8x1xf32>
    %57 = vector.broadcast %56 : vector<2x8x1xf32> to vector<2x8x8xf32>
    %58 = arith.subf %54, %57 : vector<2x8x8xf32>
    %59 = math.exp %58 : vector<2x8x8xf32>
    %cst_22 = arith.constant dense<0.000000e+00> : vector<2x8xf32>
    %60 = vector.multi_reduction <add>, %59, %cst_22 [2] : vector<2x8x8xf32> to vector<2x8xf32>
    %61 = vector.shape_cast %60 : vector<2x8xf32> to vector<2x8x1xf32>
    %62 = tpu.reciprocal %61 {approx = true} : vector<2x8x1xf32> -> vector<2x8x1xf32>
    %63 = vector.broadcast %62 : vector<2x8x1xf32> to vector<2x8x8xf32>
    %64 = arith.mulf %59, %63 : vector<2x8x8xf32>
    %65 = arith.truncf %64 : vector<2x8x8xf32> to vector<2x8x8xbf16>
    "tpu.trace_start"() <{level = 10 : i32, message = "bqk,bkh->bqh"}> : () -> ()
    %cst_23 = arith.constant dense<0.000000e+00> : vector<2x8x32xf32>
    %66 = tpu.matmul %65, %49, %cst_23 {dimension_numbers = #tpu.dot_dimension_numbers<[2], [1], [1], [2], [0, 0, 0, 1, 1, 2], [0], [0]>} : vector<2x8x8xbf16>, vector<2x8x32xbf16>, vector<2x8x32xf32> -> vector<2x8x32xf32>
    "tpu.trace_stop"() : () -> ()
    %67 = arith.addf %46, %66 : vector<2x8x32xf32>
    %68 = vector.extract_strided_slice %36 {offsets = [0, 0, 32], sizes = [2, 8, 32], strides = [1, 1, 1]} : vector<2x8x64xbf16> to vector<2x8x32xbf16>
    %69 = vector.extract_strided_slice %37 {offsets = [0, 0, 32], sizes = [2, 8, 32], strides = [1, 1, 1]} : vector<2x8x64xbf16> to vector<2x8x32xbf16>
    %70 = vector.extract_strided_slice %38 {offsets = [0, 0, 32], sizes = [2, 8, 32], strides = [1, 1, 1]} : vector<2x8x64xbf16> to vector<2x8x32xbf16>
    "tpu.trace_start"() <{level = 10 : i32, message = "bqh,bkh->bqk"}> : () -> ()
    %cst_24 = arith.constant dense<0.000000e+00> : vector<2x8x8xf32>
    %71 = tpu.matmul %68, %69, %cst_24 {dimension_numbers = #tpu.dot_dimension_numbers<[2], [2], [1], [1], [0, 0, 0, 1, 1, 1], [0], [0]>} : vector<2x8x32xbf16>, vector<2x8x32xbf16>, vector<2x8x8xf32> -> vector<2x8x8xf32>
    "tpu.trace_stop"() : () -> ()
    %cst_25 = arith.constant 0.176776692 : f32
    %72 = vector.broadcast %cst_25 : f32 to vector<2x8x8xf32>
    %73 = arith.mulf %71, %72 : vector<2x8x8xf32>
    %74 = vector.broadcast %45 : vector<1x8x8xf32> to vector<2x8x8xf32>
    %75 = arith.addf %73, %74 : vector<2x8x8xf32>
    %cst_26 = arith.constant dense<0xFF800000> : vector<2x8xf32>
    %76 = vector.multi_reduction <maximumf>, %75, %cst_26 [2] : vector<2x8x8xf32> to vector<2x8xf32>
    %77 = vector.shape_cast %76 : vector<2x8xf32> to vector<2x8x1xf32>
    %78 = vector.broadcast %77 : vector<2x8x1xf32> to vector<2x8x8xf32>
    %79 = arith.subf %75, %78 : vector<2x8x8xf32>
    %80 = math.exp %79 : vector<2x8x8xf32>
    %cst_27 = arith.constant dense<0.000000e+00> : vector<2x8xf32>
    %81 = vector.multi_reduction <add>, %80, %cst_27 [2] : vector<2x8x8xf32> to vector<2x8xf32>
    %82 = vector.shape_cast %81 : vector<2x8xf32> to vector<2x8x1xf32>
    %83 = tpu.reciprocal %82 {approx = true} : vector<2x8x1xf32> -> vector<2x8x1xf32>
    %84 = vector.broadcast %83 : vector<2x8x1xf32> to vector<2x8x8xf32>
    %85 = arith.mulf %80, %84 : vector<2x8x8xf32>
    %86 = arith.truncf %85 : vector<2x8x8xf32> to vector<2x8x8xbf16>
    "tpu.trace_start"() <{level = 10 : i32, message = "bqk,bkh->bqh"}> : () -> ()
    %cst_28 = arith.constant dense<0.000000e+00> : vector<2x8x32xf32>
    %87 = tpu.matmul %86, %70, %cst_28 {dimension_numbers = #tpu.dot_dimension_numbers<[2], [1], [1], [2], [0, 0, 0, 1, 1, 2], [0], [0]>} : vector<2x8x8xbf16>, vector<2x8x32xbf16>, vector<2x8x32xf32> -> vector<2x8x32xf32>
    "tpu.trace_stop"() : () -> ()
    %88 = arith.addf %67, %87 : vector<2x8x32xf32>
    %89 = vector.shape_cast %88 : vector<2x8x32xf32> to vector<16x32xf32>
    %90 = arith.addf %3, %89 : vector<16x32xf32>
    %c0_29 = arith.constant 0 : index
    %c0_30 = arith.constant 0 : index
    %c0_31 = arith.constant 0 : index
    %91 = vector.load %arg8[%c0_29, %c0_30, %c0_31] : memref<1x1x32xf32, #tpu.memory_space<vmem>>, vector<1x1x32xf32>
    %92 = vector.shape_cast %91 : vector<1x1x32xf32> to vector<1x32xf32>
    %c0_32 = arith.constant 0 : index
    %c0_33 = arith.constant 0 : index
    %c0_34 = arith.constant 0 : index
    %93 = vector.load %arg9[%c0_32, %c0_33, %c0_34] : memref<1x1x32xf32, #tpu.memory_space<vmem>>, vector<1x1x32xf32>
    %94 = vector.shape_cast %93 : vector<1x1x32xf32> to vector<1x32xf32>
    %cst_35 = arith.constant dense<0.000000e+00> : vector<16xf32>
    %95 = vector.multi_reduction <add>, %90, %cst_35 [1] : vector<16x32xf32> to vector<16xf32>
    %96 = vector.shape_cast %95 : vector<16xf32> to vector<16x1xf32>
    %cst_36 = arith.constant 3.200000e+01 : f32
    %97 = vector.broadcast %cst_36 : f32 to vector<16x1xf32>
    %98 = arith.divf %96, %97 : vector<16x1xf32>
    %99 = vector.broadcast %98 : vector<16x1xf32> to vector<16x32xf32>
    %100 = arith.subf %90, %99 : vector<16x32xf32>
    %101 = arith.mulf %100, %100 : vector<16x32xf32>
    %cst_37 = arith.constant dense<0.000000e+00> : vector<16xf32>
    %102 = vector.multi_reduction <add>, %101, %cst_37 [1] : vector<16x32xf32> to vector<16xf32>
    %103 = vector.shape_cast %102 : vector<16xf32> to vector<16x1xf32>
    %cst_38 = arith.constant 3.200000e+01 : f32
    %104 = vector.broadcast %cst_38 : f32 to vector<16x1xf32>
    %105 = arith.divf %103, %104 : vector<16x1xf32>
    %106 = vector.broadcast %98 : vector<16x1xf32> to vector<16x32xf32>
    %107 = arith.subf %90, %106 : vector<16x32xf32>
    %cst_39 = arith.constant 9.99999974E-6 : f32
    %108 = vector.broadcast %cst_39 : f32 to vector<16x1xf32>
    %109 = arith.addf %105, %108 : vector<16x1xf32>
    %110 = math.rsqrt %109 : vector<16x1xf32>
    %111 = vector.broadcast %110 : vector<16x1xf32> to vector<16x32xf32>
    %112 = arith.mulf %107, %111 : vector<16x32xf32>
    %113 = vector.broadcast %92 : vector<1x32xf32> to vector<16x32xf32>
    %114 = arith.mulf %112, %113 : vector<16x32xf32>
    %115 = vector.broadcast %94 : vector<1x32xf32> to vector<16x32xf32>
    %116 = arith.addf %114, %115 : vector<16x32xf32>
    %117 = arith.truncf %116 : vector<16x32xf32> to vector<16x32xbf16>
    %c0_40 = arith.constant 0 : index
    %c0_41 = arith.constant 0 : index
    %c0_42 = arith.constant 0 : index
    %118 = vector.load %arg10[%c0_40, %c0_41, %c0_42] : memref<1x32x128xbf16, #tpu.memory_space<vmem>>, vector<1x32x128xbf16>
    %119 = vector.shape_cast %118 : vector<1x32x128xbf16> to vector<32x128xbf16>
    %cst_43 = arith.constant dense<0.000000e+00> : vector<16x128xf32>
    %120 = tpu.matmul %117, %119, %cst_43 {dimension_numbers = #tpu.dot_dimension_numbers<[1], [0], [0], [1], [0, 0, 1, 1], [], []>} : vector<16x32xbf16>, vector<32x128xbf16>, vector<16x128xf32> -> vector<16x128xf32>
    %c0_44 = arith.constant 0 : index
    %c0_45 = arith.constant 0 : index
    %c0_46 = arith.constant 0 : index
    %121 = vector.load %arg11[%c0_44, %c0_45, %c0_46] : memref<1x1x128xf32, #tpu.memory_space<vmem>>, vector<1x1x128xf32>
    %122 = vector.shape_cast %121 : vector<1x1x128xf32> to vector<1x128xf32>
    %123 = vector.broadcast %122 : vector<1x128xf32> to vector<16x128xf32>
    %124 = arith.addf %120, %123 : vector<16x128xf32>
    %cst_47 = arith.constant 0.000000e+00 : f32
    %125 = vector.broadcast %cst_47 : f32 to vector<16x128xf32>
    %126 = arith.maximumf %124, %125 : vector<16x128xf32>
    %127 = arith.truncf %126 : vector<16x128xf32> to vector<16x128xbf16>
    %c0_48 = arith.constant 0 : index
    %c0_49 = arith.constant 0 : index
    %c0_50 = arith.constant 0 : index
    %128 = vector.load %arg12[%c0_48, %c0_49, %c0_50] : memref<1x128x32xbf16, #tpu.memory_space<vmem>>, vector<1x128x32xbf16>
    %129 = vector.shape_cast %128 : vector<1x128x32xbf16> to vector<128x32xbf16>
    %cst_51 = arith.constant dense<0.000000e+00> : vector<16x32xf32>
    %130 = tpu.matmul %127, %129, %cst_51 {dimension_numbers = #tpu.dot_dimension_numbers<[1], [0], [0], [1], [0, 0, 1, 1], [], []>} : vector<16x128xbf16>, vector<128x32xbf16>, vector<16x32xf32> -> vector<16x32xf32>
    %c0_52 = arith.constant 0 : index
    %c0_53 = arith.constant 0 : index
    %c0_54 = arith.constant 0 : index
    %131 = vector.load %arg13[%c0_52, %c0_53, %c0_54] : memref<1x1x32xf32, #tpu.memory_space<vmem>>, vector<1x1x32xf32>
    %132 = vector.shape_cast %131 : vector<1x1x32xf32> to vector<1x32xf32>
    %133 = vector.broadcast %132 : vector<1x32xf32> to vector<16x32xf32>
    %134 = arith.addf %130, %133 : vector<16x32xf32>
    %135 = arith.addf %134, %116 : vector<16x32xf32>
    %c0_55 = arith.constant 0 : index
    %c0_56 = arith.constant 0 : index
    %136 = vector.load %arg17[%c0_55, %c0_56] : memref<16x32xf32, #tpu.memory_space<vmem>>, vector<16x32xf32>
    tpu.vector_store %arg17[%c0_55, %c0_56], %135 {strides = array<i32>} : memref<16x32xf32, #tpu.memory_space<vmem>>, vector<16x32xf32>,
    %c1_i32 = arith.constant 1 : i32
    %137 = arith.cmpi eq, %arg1, %c1_i32 : i32
    %138 = arith.extui %137 : i1 to i32
    %c0_i32_57 = arith.constant 0 : i32
    %139 = arith.cmpi ne, %138, %c0_i32_57 : i32
    scf.if %139 {
      %140 = arith.truncf %135 : vector<16x32xf32> to vector<16x32xbf16>
      %c0_58 = arith.constant 0 : index
      %c0_59 = arith.constant 0 : index
      %141 = vector.load %arg14[%c0_58, %c0_59] : memref<32x128xbf16, #tpu.memory_space<vmem>>, vector<32x128xbf16>
      %cst_60 = arith.constant dense<0.000000e+00> : vector<16x128xf32>
      %142 = tpu.matmul %140, %141, %cst_60 {dimension_numbers = #tpu.dot_dimension_numbers<[1], [0], [0], [1], [0, 0, 1, 1], [], []>} : vector<16x32xbf16>, vector<32x128xbf16>, vector<16x128xf32> -> vector<16x128xf32>
      %c0_61 = arith.constant 0 : index
      %c0_62 = arith.constant 0 : index
      %143 = vector.load %arg15[%c0_61, %c0_62] : memref<1x128xf32, #tpu.memory_space<vmem>>, vector<1x128xf32>
      %144 = vector.broadcast %143 : vector<1x128xf32> to vector<16x128xf32>
      %145 = arith.addf %142, %144 : vector<16x128xf32>
      %146 = arith.negf %145 : vector<16x128xf32>
      %147 = math.exp %146 : vector<16x128xf32>
      %cst_63 = arith.constant 1.000000e+00 : f32
      %148 = vector.broadcast %cst_63 : f32 to vector<16x128xf32>
      %149 = arith.addf %148, %147 : vector<16x128xf32>
      %150 = arith.divf %148, %149 : vector<16x128xf32>
      %151 = vector.shape_cast %150 : vector<16x128xf32> to vector<2x8x128xf32>
      %c0_64 = arith.constant 0 : index
      %c0_65 = arith.constant 0 : index
      %c0_66 = arith.constant 0 : index
      %152 = vector.load %arg16[%c0_64, %c0_65, %c0_66] : memref<2x8x128xf32, #tpu.memory_space<vmem>>, vector<2x8x128xf32>
      tpu.vector_store %arg16[%c0_64, %c0_65, %c0_66], %151 {strides = array<i32>} : memref<2x8x128xf32, #tpu.memory_space<vmem>>, vector<2x8x128xf32>,
    } else {
    }
    return
  }
  func.func @transform_0(%arg0: i32, %arg1: i32) -> (i32, i32, i32) {
    %c0_i32 = arith.constant 0 : i32
    %c0_i32_0 = arith.constant 0 : i32
    %c0_i32_1 = arith.constant 0 : i32
    return %arg0, %c0_i32, %c0_i32_0 : i32, i32, i32
  }
  func.func @transform_1(%arg0: i32, %arg1: i32) -> (i32, i32) {
    %c0_i32 = arith.constant 0 : i32
    %c0_i32_0 = arith.constant 0 : i32
    %c0_i32_1 = arith.constant 0 : i32
    return %c0_i32, %c0_i32_0 : i32, i32
  }
  func.func @transform_2(%arg0: i32, %arg1: i32) -> (i32, i32) {
    %c0_i32 = arith.constant 0 : i32
    %c0_i32_0 = arith.constant 0 : i32
    %c0_i32_1 = arith.constant 0 : i32
    return %c0_i32, %c0_i32_0 : i32, i32
  }
  func.func @transform_3(%arg0: i32, %arg1: i32) -> (i32, i32, i32) {
    %c0_i32 = arith.constant 0 : i32
    %c0_i32_0 = arith.constant 0 : i32
    %c0_i32_1 = arith.constant 0 : i32
    return %arg1, %c0_i32, %c0_i32_0 : i32, i32, i32
  }
  func.func @transform_4(%arg0: i32, %arg1: i32) -> (i32, i32, i32) {
    %c0_i32 = arith.constant 0 : i32
    %c0_i32_0 = arith.constant 0 : i32
    %c0_i32_1 = arith.constant 0 : i32
    return %arg1, %c0_i32, %c0_i32_0 : i32, i32, i32
  }
  func.func @transform_5(%arg0: i32, %arg1: i32) -> (i32, i32, i32) {
    %c0_i32 = arith.constant 0 : i32
    %c0_i32_0 = arith.constant 0 : i32
    %c0_i32_1 = arith.constant 0 : i32
    return %arg1, %c0_i32, %c0_i32_0 : i32, i32, i32
  }
  func.func @transform_6(%arg0: i32, %arg1: i32) -> (i32, i32, i32) {
    %c0_i32 = arith.constant 0 : i32
    %c0_i32_0 = arith.constant 0 : i32
    %c0_i32_1 = arith.constant 0 : i32
    return %arg1, %c0_i32, %c0_i32_0 : i32, i32, i32
  }
  func.func @transform_7(%arg0: i32, %arg1: i32) -> (i32, i32, i32) {
    %c0_i32 = arith.constant 0 : i32
    %c0_i32_0 = arith.constant 0 : i32
    %c0_i32_1 = arith.constant 0 : i32
    return %arg1, %c0_i32, %c0_i32_0 : i32, i32, i32
  }
  func.func @transform_8(%arg0: i32, %arg1: i32) -> (i32, i32, i32) {
    %c0_i32 = arith.constant 0 : i32
    %c0_i32_0 = arith.constant 0 : i32
    %c0_i32_1 = arith.constant 0 : i32
    return %arg1, %c0_i32, %c0_i32_0 : i32, i32, i32
  }
  func.func @transform_9(%arg0: i32, %arg1: i32) -> (i32, i32, i32) {
    %c0_i32 = arith.constant 0 : i32
    %c0_i32_0 = arith.constant 0 : i32
    %c0_i32_1 = arith.constant 0 : i32
    return %arg1, %c0_i32, %c0_i32_0 : i32, i32, i32
  }
  func.func @transform_10(%arg0: i32, %arg1: i32) -> (i32, i32, i32) {
    %c0_i32 = arith.constant 0 : i32
    %c0_i32_0 = arith.constant 0 : i32
    %c0_i32_1 = arith.constant 0 : i32
    return %arg1, %c0_i32, %c0_i32_0 : i32, i32, i32
  }
  func.func @transform_11(%arg0: i32, %arg1: i32) -> (i32, i32, i32) {
    %c0_i32 = arith.constant 0 : i32
    %c0_i32_0 = arith.constant 0 : i32
    %c0_i32_1 = arith.constant 0 : i32
    return %arg1, %c0_i32, %c0_i32_0 : i32, i32, i32
  }
  func.func @transform_12(%arg0: i32, %arg1: i32) -> (i32, i32) {
    %c0_i32 = arith.constant 0 : i32
    %c0_i32_0 = arith.constant 0 : i32
    %c0_i32_1 = arith.constant 0 : i32
    return %c0_i32, %c0_i32_0 : i32, i32
  }
  func.func @transform_13(%arg0: i32, %arg1: i32) -> (i32, i32) {
    %c0_i32 = arith.constant 0 : i32
    %c0_i32_0 = arith.constant 0 : i32
    %c0_i32_1 = arith.constant 0 : i32
    return %c0_i32, %c0_i32_0 : i32, i32
  }
  func.func @transform_14(%arg0: i32, %arg1: i32) -> (i32, i32, i32) {
    %c0_i32 = arith.constant 0 : i32
    %c0_i32_0 = arith.constant 0 : i32
    %c0_i32_1 = arith.constant 0 : i32
    return %arg0, %c0_i32, %c0_i32_0 : i32, i32, i32
  }
}

</mosaic_0001>

<bundles_post_ra>
// kernel: tpu_custom_call.1
= control target key start
LH: loop header
LB: loop body
LE: loop exit
PB: predicated region body
PF: predicated region fallthrough
CT: control target
= control target key end

     0   :  { %s2006_s0 = inlined_call_operand.vmem [shape: f32[2,8,4], index: 0, kind: input, shape index: {}]   ;;  %s2007_s1 = inlined_call_operand.vmem [shape: bf16[4,32], index: 1, kind: input, shape index: {}]   ;;  %s2008_s2 = inlined_call_operand.vmem [shape: f32[16,32], index: 2, kind: input, shape index: {}]   ;;  %s2009_s3 = inlined_call_operand.vmem [shape: f32[2,1,32], index: 3, kind: input, shape index: {}]   ;;  %s2010_s4 = inlined_call_operand.vmem [shape: f32[2,1,32], index: 4, kind: input, shape index: {}]   ;;  %s2011_s5 = inlined_call_operand.vmem [shape: bf16[2,32,192], index: 5, kind: input, shape index: {}]   ;;  %s2012_s6 = inlined_call_operand.vmem [shape: f32[2,1,32], index: 6, kind: input, shape index: {}]   ;;  %s2013_s7 = inlined_call_operand.vmem [shape: f32[2,1,32], index: 7, kind: input, shape index: {}]   ;;  %s2014_s8 = inlined_call_operand.vmem [shape: bf16[2,32,128], index: 8, kind: input, shape index: {}]   ;;  %s2015_s9 = inlined_call_operand.vmem [shape: f32[2,1,128], index: 9, kind: input, shape index: {}]   ;;  %s2016_s10 = inlined_call_operand.vmem [shape: bf16[2,128,32], index: 10, kind: input, shape index: {}]   ;;  %s2017_s11 = inlined_call_operand.vmem [shape: f32[2,1,32], index: 11, kind: input, shape index: {}]   ;;  %s2018_s12 = inlined_call_operand.vmem [shape: bf16[32,128], index: 12, kind: input, shape index: {}]   ;;  %s2019_s13 = inlined_call_operand.vmem [shape: f32[1,128], index: 13, kind: input, shape index: {}]   ;;  %s2020_s14 = inlined_call_operand.hbm [shape: f32[2,8,128], index: 14, kind: output, shape index: {}]  }
   0x1   :  { %2024 = sst [smem:[#allocation9_spill]] %s2018_s12 }
   0x2   :  { %2025 = sst [smem:[#allocation10_spill]] %s2019_s13 }
   0x3   :  { %2026 = sst [smem:[#allocation11_spill]] %s2020_s14 }
   0x4   :  { %19 = vsyncpa [#allocation4], 0  ;;  %s1777_s29 = smov 0   ;;  %s1779_s30 = smov 0  }
   0x5   :  { %s1781_s15 = smov 0  }
   0x6 LB: > { %2027 = sst [smem:[#allocation6_spill]] %s1688_s30  ;;  %s34_s17 = sadd.s32 1, %s1688_s30  ;;  %s1692_s15 = sphi %s1781_s15, %s25_s15   ;;  %s1688_s30 = sphi %s1779_s30, %s2041_s30   ;;  %s1684_s29 = sphi %s1777_s29, %s2040_s29  }
   0x7   : > { %2028 = sst [smem:[#allocation7_spill]] %s1692_s15  ;;  %p35_p0 = scmp.ge.s32.totalorder %s34_s17, 2 }
   0x8   : > { %p1448_p1 = scmp.ge.s32.totalorder %s1692_s15, 1  ;;  %p504_p2 = scmp.lt.s32.totalorder %s1692_s15, 3 }
   0x9   : > { %s2043_s17 = smov (%p35_p0, %s34_s17), 0 }
   0xa   : > { %2029 = sst [smem:[#allocation8_spill]] %s2043_s17  ;;  %p505_p3 = pnand %p1448_p1, %p504_p2 }
   0xb   : > { %p584_p4 = scmp.lt.s32.totalorder (!%p505_p3), %s1684_s29, 1  ;;  %p1455_p5 = scmp.ne.s32.totalorder (!%p505_p3), %s1684_s29, 0 }
   0xc   : > { %508 = sbr.rel (%p505_p3) target bundleno = 1991 (0x7c7), region = 76 }
  0x11   : > { %s1800_s18 = scalar_select %p584_p4, %s1684_s29, 1 }
  0x13   : > { %s1540_s25 = sshll.u32 %s1800_s18, 5  ;;  %s600_s14 = scalar_lea.vmem %s2013_s7, %s1800_s18 }
  0x14   : > { %s1818_s20 = scalar_lea.vmem %s2011_s5, %s1540_s25  ;;  %s1541_s15 = sshll.u32 %s1800_s18, 4 }
  0x15   : > { %s608_s22 = scalar_lea.vmem %s2015_s9, %s1800_s18  ;;  %s1832_s12 = scalar_lea.vmem %s2014_s8, %s1541_s15 }
  0x16   : > { %s1542_s26 = sshll.u32 %s1800_s18, 6  ;;  %s616_s30 = scalar_lea.vmem %s2017_s11, %s1800_s18 }
  0x17   : > { %s1838_s16 = scalar_lea.vmem %s2016_s10, %s1542_s26  ;;  %622 = sbr.rel (%p1455_p5) target bundleno = 170 (0xaa), region = 80 }
  0x1c   : > { %v626_v0 = vld [vmem:[%s2007_s1] sm:$0x3]  ;;  %vm633_vm0 = vcmask 1041408   ;;  %v624_v2 = vld [vmem:[%s2006_s0 + $0x8] sm:$0xff]  ;;  %vm629_vm1 = vcmask 31744   ;;  %vm651_vm2 = vcmask 261120  }
  0x1d   : > { %v623_v1 = vld [vmem:[%s2006_s0] sm:$0xff]  ;;  %v635_v3 = vsel %vm633_vm0, %v626_v0, 0  ;;  %v628_v8 = vld [vmem:[%s2008_s2 + $0x8] sm:$0xff] }
  0x1e   : > { %v625_v4 = vpack.c.bf16 %v624_v2, %v623_v1  ;;  %644 = vmatpush.bf16.msra.mxu0 %v635_v3  ;;  %v627_v5 = vld [vmem:[%s2008_s2] sm:$0xff] }
  0x21   : > { %1456 = vmatmul.msk.bf16.vlgmr.msra.gmra.mxu0 %vm629_vm1, %v625_v4 }
  0x9e   : > { %v646_v6 = vpop.f32.mrf.mxu0 }
  0x9f   : > { %v647_v7 = vadd.f32 %v646_v6, %v627_v5 }
  0xa1   : > { %652 = vst.msk [vmem:[#allocation2] sm:$0xff] %vm651_vm2, %v647_v7 }
  0xa6   : > { %v648_v9 = vpop.f32.mrf.mxu0 }
  0xa7   : > { %v649_v10 = vadd.f32 %v648_v9, %v628_v8 }
  0xa9   : > { %653 = vst.msk [vmem:[#allocation2 + $0x8] sm:$0xff] %vm651_vm2, %v649_v10 }
  0xaa PF: > { %v1860_v11 = vld [vmem:[#allocation2] sm:$0xff]  ;;  %vm658_vm3 = vcmask 261120   ;;  %v1694_v15 = vmov 32.0   ;;  %v1467_v32 = vld [vmem:[%s1818_s20 + $0x10] sm:$0xf]  ;;  %s2030_s13 = scalar_lea.vmem %s2009_s3, %s1800_s18  ;;  %s2031_s21 = scalar_lea.vmem %s2010_s4, %s1800_s18  ;;  %vm941_vm11 = vcmask 1043456  }
  0xab   : > { %v659_v12 = vsel %vm658_vm3, %v1860_v11, 0.0  ;;  %1603 = vrcp.f32 %v1694_v15  ;;  %v1546_v33 = vld [vmem:[%s1818_s20 + $0x14] sm:$0xf0]  ;;  %v1545_v34 = vld [vmem:[%s1818_s20 + $0x14] sm:$0xf]  ;;  %s1695_s24 = smov 32   ;;  %s2032_s27 = scalar_lea.vmem %s2012_s6, %s1800_s18 }
  0xac   : > { %660 = vadd.xlane.f32.xlu0 %v659_v12  ;;  %v1468_v35 = vor.u32 %v1546_v33, %v1467_v32  ;;  %v1469_v36 = vld [vmem:[%s1818_s20 + $0x18] sm:$0xf0]  ;;  %v1459_v38 = vld [vmem:[%s1818_s20] sm:$0xf]  ;;  %v1544_v39 = vld [vmem:[%s1818_s20 + $0x4] sm:$0xf0] }
  0xad   : > { %v1472_v37 = vor.u32 %v1545_v34, %v1469_v36  ;;  %v1543_v40 = vld [vmem:[%s1818_s20 + $0x4] sm:$0xf]  ;;  %v1460_v42 = vor.u32 %v1544_v39, %v1459_v38  ;;  %v1461_v43 = vld [vmem:[%s1818_s20 + $0x8] sm:$0xf0]  ;;  %v1597_v63 = vld [vmem:[%s2030_s13] ss:$0 sm:$0xff]  ;;  %v778_v36 = vlaneseq }
  0xae   : > { %754 = vmatpush.bf16.msra.mxu0 %v1468_v35  ;;  %v1464_v45 = vor.u32 %v1543_v40, %v1461_v43  ;;  %v1598_v4 = vld [vmem:[%s2031_s21] ss:$0 sm:$0xff]  ;;  %s1696_s28 = smov 64   ;;  %s1697_s23 = smov 96   ;;  %v1698_v40 = vmov -1e+30  }
  0xaf   : > { %768 = vmatpush.bf16.msra.mxu1 %v1472_v37  ;;  %v779_v37 = vshrl.u32 %v778_v36, 7  ;;  %v781_v38 = vand.u32 127, %v778_v36  ;;  %vm836_vm13 = vcmask 64512   ;;  %p1524_p6 = scmp.ne.s32.totalorder %s1684_s29, 1 }
  0xb0   : > { %v1864_v13 = vld [vmem:[#allocation2 + $0x8] sm:$0xff]  ;;  %s2033_s15 = sld [smem:[#allocation9_spill]] (!%p1524_p6) }
  0xb1   : > { %v662_v14 = vsel %vm658_vm3, %v1864_v13, 0.0  ;;  %v1604_v16 = vpop.eup %1603  ;;  %vm782_vm12 = vcmp.le.s32.totalorder %v781_v38, %v779_v37 }
  0xb2   : > { %v666_v17 = vmul.f32 32.0, %v1604_v16  ;;  %vm670_vm4 = vweird.f32 %v1604_v16  ;;  %755 = vmatpush.bf16.msra.mxu0 %v1460_v42 }
  0xb3   : > { %769 = vmatpush.bf16.msra.mxu1 %v1464_v45 }
  0xb4   : > { %663 = vadd.xlane.f32.xlu0 %v662_v14  ;;  %v667_v18 = vsub.f32 1.0, %v666_v17 }
  0xb6   : > { %v668_v19 = vmul.f32 %v1604_v16, %v667_v18  ;;  %s2034_s21 = smov (!%p1524_p6), %s2033_s15 }
  0xb8   : > { %v669_v20 = vadd.f32 %v1604_v16, %v668_v19 }
  0xba   : > { %v1868_v21 = vsel %vm670_vm4, %v1604_v16, %v669_v20 }
 0x11f   : > { %v661_v22 = vpop.xlane.xlu0 %660 }
 0x120   : > { %v672_v23 = vmul.f32 %v1868_v21, %v661_v22 }
 0x122   : > { %v674_v24 = vsub.f32 %v1860_v11, %v672_v23 }
 0x124   : > { %v676_v25 = vmul.f32 %v674_v24, %v674_v24 }
 0x126   : > { %v678_v26 = vsel %vm658_vm3, %v676_v25, 0.0 }
 0x127   : > { %679 = vadd.xlane.f32.xlu1 %v678_v26  ;;  %v664_v27 = vpop.xlane.xlu0 %663 }
 0x128   : > { %v673_v28 = vmul.f32 %v1868_v21, %v664_v27 }
 0x12a   : > { %v675_v29 = vsub.f32 %v1864_v13, %v673_v28 }
 0x12c   : > { %v677_v30 = vmul.f32 %v675_v29, %v675_v29 }
 0x12e   : > { %v681_v31 = vsel %vm658_vm3, %v677_v30, 0.0 }
 0x12f   : > { %682 = vadd.xlane.f32.xlu1 %v681_v31 }
 0x19a   : > { %v680_v41 = vpop.xlane.xlu1 %679 }
 0x19b   : > { %v684_v44 = vmul.f32 %v680_v41, %v1868_v21  ;;  %v783_v41 = vsel %vm782_vm12, 0.0, %v1698_v40 }
 0x19d   : > { %v686_v46 = vadd.f32 1e-05, %v684_v44 }
 0x19f   : > { %1605 = vrsqrt.f32 %v686_v46  ;;  %vm694_vm6 = vweird.f32 %v686_v46 }
 0x1a2   : > { %v683_v47 = vpop.xlane.xlu1 %682 }
 0x1a3   : > { %v685_v48 = vmul.f32 %v683_v47, %v1868_v21 }
 0x1a5   : > { %v1606_v49 = vpop.eup %1605  ;;  %v687_v50 = vadd.f32 1e-05, %v685_v48 }
 0x1a6   : > { %v689_v51 = vmul.f32 %v1606_v49, %v686_v46  ;;  %vm695_vm5 = vweird.f32 %v1606_v49 }
 0x1a7   : > { %1607 = vrsqrt.f32 %v687_v50  ;;  %vm696_vm7 = vmor %vm694_vm6, %vm695_vm5  ;;  %vm704_vm9 = vweird.f32 %v687_v50 }
 0x1a8   : > { %v690_v52 = vmul.f32 %v1606_v49, %v689_v51 }
 0x1aa   : > { %v691_v53 = vmul.f32 0.5, %v690_v52 }
 0x1ac   : > { %v692_v54 = vsub.f32 1.5, %v691_v53 }
 0x1ad   : > { %v1608_v55 = vpop.eup %1607 }
 0x1ae   : > { %v693_v56 = vmul.f32 %v1606_v49, %v692_v54  ;;  %v699_v57 = vmul.f32 %v1608_v55, %v687_v50  ;;  %vm705_vm8 = vweird.f32 %v1608_v55 }
 0x1af   : > { %vm706_vm10 = vmor %vm704_vm9, %vm705_vm8 }
 0x1b0   : > { %v700_v58 = vmul.f32 %v1608_v55, %v699_v57  ;;  %v697_v59 = vsel %vm696_vm7, %v1606_v49, %v693_v56 }
 0x1b1   : > { %v708_v62 = vmul.f32 %v697_v59, %v674_v24 }
 0x1b2   : > { %v701_v60 = vmul.f32 0.5, %v700_v58 }
 0x1b3   : > { %v713_v3 = vmul.f32 %v1597_v63, %v708_v62 }
 0x1b4   : > { %v702_v61 = vsub.f32 1.5, %v701_v60 }
 0x1b5   : > { %v718_v6 = vadd.f32 %v1598_v4, %v713_v3 }
 0x1b6   : > { %v703_v0 = vmul.f32 %v1608_v55, %v702_v61 }
 0x1b8   : > { %v707_v1 = vsel %vm706_vm10, %v1608_v55, %v703_v0 }
 0x1b9   : > { %v709_v2 = vmul.f32 %v707_v1, %v675_v29 }
 0x1bb   : > { %v714_v5 = vmul.f32 %v1597_v63, %v709_v2 }
 0x1bd   : > { %v719_v7 = vadd.f32 %v1598_v4, %v714_v5 }
 0x1bf   : > { %v720_v8 = vpack.c.bf16 %v719_v7, %v718_v6 }
 0x1c1   : > { %1473 = vmatmul.msk.bf16.vlgmr.msra.gmra.mxu0 %vm658_vm3, %v720_v8  ;;  %1474 = vmatmul.msk.bf16.vlgmr.msra.gmra.mxu1 %vm658_vm3, %v720_v8 }
 0x23e   : > { %v757_v9 = vpop.f32.mrf.mxu0  ;;  %v771_v10 = vpop.f32.mrf.mxu1 }
 0x23f   : > { %v1898_v12 = vpack.c.bf16 %v771_v10, %v757_v9 }
 0x241   : > { %v785_v14 = vunpack.c.l.b16 %v1898_v12  ;;  %v980_v26 = vrot.slane %v1898_v12, 4 }
 0x243   : > { %v786_v15 = vpack.c.b16 %v785_v14, %v785_v14  ;;  %v985_v29 = vsel %vm941_vm11, %v980_v26, 0 }
 0x245   : > { %863 = vrot.lane.b32.xlu0 %v786_v15, %s1695_s24  ;;  %787 = vrot.lane.b32.xlu2 %v786_v15, %s1696_s28 }
 0x246   : > { %v759_v16 = vpop.f32.mrf.mxu0  ;;  %v773_v17 = vpop.f32.mrf.mxu1 }
 0x247   : > { %v1901_v18 = vpack.c.bf16 %v773_v17, %v759_v16 }
 0x249   : > { %v809_v19 = vunpack.c.l.b16 %v1901_v18  ;;  %v1000_v31 = vrot.slane %v1901_v18, 4 }
 0x24b   : > { %v810_v20 = vpack.c.b16 %v809_v19, %v809_v19  ;;  %v1005_v34 = vsel %vm941_vm11, %v1000_v31, 0 }
 0x24d   : > { %886 = vrot.lane.b32.xlu1 %v810_v20, %s1695_s24  ;;  %811 = vrot.lane.b32.xlu2 %v810_v20, %s1696_s28 }
 0x255   : > { %861 = vrot.lane.b32.xlu2 %v786_v15, %s1697_s23 }
 0x25d   : > { %884 = vrot.lane.b32.xlu2 %v810_v20, %s1697_s23 }
 0x29f   : > { %v788_v22 = vpop.permute.xlu2 %787 }
 0x2a0   : > { %v793_v23 = vsel %vm658_vm3, %v788_v22, 0 }
 0x2a1   : > { %802 = vmatpush.bf16.xpose.msra.mxu2 %v793_v23 }
 0x2a7   : > { %v812_v24 = vpop.permute.xlu2 %811 }
 0x2a8   : > { %1475 = vmatmul.msk.bf16.vlgmr.msra.gmra.mxu2 %vm658_vm3, %v1898_v12  ;;  %v817_v25 = vsel %vm658_vm3, %v812_v24, 0 }
 0x2a9   : > { %826 = vmatpush.bf16.xpose.msra.mxu3 %v817_v25 }
 0x2af   : > { %v862_v30 = vpop.permute.xlu2 %861 }
 0x2b0   : > { %1476 = vmatmul.msk.bf16.vlgmr.msra.gmra.mxu3 %vm658_vm3, %v1901_v18 }
 0x2b7   : > { %v864_v27 = vpop.permute.xlu0 %863  ;;  %v885_v35 = vpop.permute.xlu2 %884 }
 0x2b8   : > { %v869_v28 = vsel %vm658_vm3, %v864_v27, 0 }
 0x2b9   : > { %878 = vmatpush.bf16.xpose.msrb.mxu0 %v869_v28 }
 0x2bf   : > { %v887_v32 = vpop.permute.xlu1 %886 }
 0x2c0   : > { %1477 = vmatmul.msk.bf16.vlgmr.msrb.gmra.mxu0 %vm658_vm3, %v862_v30  ;;  %v892_v33 = vsel %vm658_vm3, %v887_v32, 0 }
 0x2c1   : > { %994 = vmatpush.bf16.msra.mxu0 %v985_v29  ;;  %901 = vmatpush.bf16.xpose.msrb.mxu1 %v892_v33 }
 0x2c8   : > { %1478 = vmatmul.msk.bf16.vlgmr.msrb.gmra.mxu1 %vm658_vm3, %v885_v35 }
 0x2c9   : > { %1014 = vmatpush.bf16.msra.mxu1 %v1005_v34 }
 0x32b   : > { %v804_v39 = vpop.f32.mrf.mxu2 }
 0x32c   : > { %v832_v42 = vmul.f32 0.17677669, %v804_v39 }
 0x32e   : > { %v834_v43 = vadd.f32 %v832_v42, %v783_v41 }
 0x330   : > { %v837_v44 = vsel %vm836_vm13, %v834_v43, -inf }
 0x331   : > { %838 = vmax.xlane.f32.xlu1 %v837_v44 }
 0x333   : > { %v806_v45 = vpop.f32.mrf.mxu2  ;;  %v828_v46 = vpop.f32.mrf.mxu3 }
 0x334   : > { %v833_v51 = vmul.f32 0.17677669, %v828_v46 }
 0x336   : > { %v835_v56 = vadd.f32 %v833_v51, %v783_v41 }
 0x338   : > { %v840_v58 = vsel %vm836_vm13, %v835_v56, -inf }
 0x33b   : > { %v830_v47 = vpop.f32.mrf.mxu3 }
 0x33d   : > { %v880_v48 = vpop.f32.mrf.mxu0 }
 0x33e   : > { %v907_v49 = vmul.f32 0.17677669, %v880_v48 }
 0x340   : > { %v909_v50 = vadd.f32 %v907_v49, %v783_v41 }
 0x342   : > { %v911_v52 = vsel %vm836_vm13, %v909_v50, -inf }
 0x343   : > { %912 = vmax.xlane.f32.xlu2 %v911_v52 }
 0x345   : > { %v882_v53 = vpop.f32.mrf.mxu0  ;;  %v903_v54 = vpop.f32.mrf.mxu1 }
 0x346   : > { %v908_v55 = vmul.f32 0.17677669, %v903_v54 }
 0x348   : > { %v910_v57 = vadd.f32 %v908_v55, %v783_v41 }
 0x34a   : > { %v914_v59 = vsel %vm836_vm13, %v910_v57, -inf }
 0x34b   : > { %841 = vmax.xlane.f32.xlu2 %v840_v58  ;;  %915 = vmax.xlane.f32.xlu0 %v914_v59 }
 0x34d   : > { %v905_v60 = vpop.f32.mrf.mxu1 }
 0x3a4   : > { %v839_v61 = vpop.xlane.xlu1 %838 }
 0x3a5   : > { %v843_v62 = vsub.f32 %v834_v43, %v839_v61 }
 0x3a7   : > { %v845_v63 = vmul.f32 1.442695, %v843_v62 }
 0x3a9   : > { %1609 = vpow2.f32 %v845_v63 }
 0x3af   : > { %v1610_v0 = vpop.eup %1609 }
 0x3b0   : > { %v849_v1 = vsel %vm836_vm13, %v1610_v0, 0.0 }
 0x3b1   : > { %850 = vadd.xlane.f32.xlu1 %v849_v1 }
 0x3b6   : > { %v913_v2 = vpop.xlane.xlu2 %912 }
 0x3b7   : > { %v917_v3 = vsub.f32 %v909_v50, %v913_v2 }
 0x3b9   : > { %v919_v4 = vmul.f32 1.442695, %v917_v3 }
 0x3bb   : > { %1611 = vpow2.f32 %v919_v4  ;;  %v1547_v4 = vld [vmem:[%s1832_s12] sm:$0xff] }
 0x3be   : > { %v916_v5 = vpop.xlane.xlu0 %915  ;;  %v842_v6 = vpop.xlane.xlu2 %841 }
 0x3bf   : > { %v918_v7 = vsub.f32 %v910_v57, %v916_v5  ;;  %v844_v8 = vsub.f32 %v835_v56, %v842_v6  ;;  %v1556_v5 = vld [vmem:[%s1838_s16 + $0x38] sm:$0xff] }
 0x3c1   : > { %v1612_v9 = vpop.eup %1611  ;;  %v921_v10 = vmul.f32 1.442695, %v918_v7  ;;  %v847_v14 = vmul.f32 1.442695, %v844_v8  ;;  %v1555_v8 = vld [vmem:[%s1838_s16 + $0x30] sm:$0xff] }
 0x3c2   : > { %v923_v15 = vsel %vm836_vm13, %v1612_v9, 0.0 }
 0x3c3   : > { %1613 = vpow2.f32 %v921_v10  ;;  %924 = vadd.xlane.f32.xlu0 %v923_v15  ;;  %v1554_v15 = vld [vmem:[%s1838_s16 + $0x28] sm:$0xff] }
 0x3c4   : > { %1615 = vpow2.f32 %v847_v14 }
 0x3c9   : > { %v1614_v16 = vpop.eup %1613 }
 0x3ca   : > { %v1616_v17 = vpop.eup %1615  ;;  %958 = vrot.lane.b32.xlu1 %v1901_v18, %s1697_s23  ;;  %v926_v19 = vsel %vm836_vm13, %v1614_v16, 0.0 }
 0x3cb   : > { %927 = vadd.xlane.f32.xlu2 %v926_v19  ;;  %v852_v20 = vsel %vm836_vm13, %v1616_v17, 0.0  ;;  %v1553_v19 = vld [vmem:[%s1838_s16 + $0x20] sm:$0xff] }
 0x3cc   : > { %853 = vadd.xlane.f32.xlu0 %v852_v20 }
 0x3e3   : > { %935 = vrot.lane.b32.xlu2 %v1898_v12, %s1697_s23  ;;  %s2035_s23 = sld [smem:[#allocation10_spill]] (!%p1524_p6) }
 0x424   : > { %v851_v22 = vpop.xlane.xlu1 %850 }
 0x425   : > { %1617 = vrcp.f32 %v851_v22 }
 0x42b   : > { %v1618_v23 = vpop.eup %1617 }
 0x42c   : > { %v857_v24 = vmul.f32 %v1618_v23, %v1610_v0  ;;  %v1548_v0 = vld [vmem:[%s1832_s12 + $0x8] sm:$0xff] }
 0x42e   : > { %v859_v25 = vpack.c.bf16 %v857_v24, %v857_v24 }
 0x430   : > { %1481 = vmatmul.msk.bf16.vlgmr.msra.gmra.mxu0 %vm836_vm13, %v859_v25 }
 0x436   : > { %v925_v26 = vpop.xlane.xlu0 %924 }
 0x437   : > { %1619 = vrcp.f32 %v925_v26 }
 0x43c   : > { %v959_v27 = vpop.permute.xlu1 %958 }
 0x43d   : > { %v960_v28 = vrot.slane %v959_v27, 4  ;;  %v1620_v31 = vpop.eup %1619 }
 0x43e   : > { %v928_v18 = vpop.xlane.xlu2 %927  ;;  %v931_v35 = vmul.f32 %v1620_v31, %v1612_v9  ;;  %v1600_v31 = vld [vmem:[%s600_s14] ss:$0 sm:$0xff] }
 0x43f   : > { %v854_v29 = vpop.xlane.xlu0 %853  ;;  %1621 = vrcp.f32 %v928_v18  ;;  %v965_v30 = vsel %vm941_vm11, %v960_v28, 0  ;;  %v1599_v28 = vld [vmem:[%s2032_s27] ss:$0 sm:$0xff] }
 0x440   : > { %1623 = vrcp.f32 %v854_v29  ;;  %974 = vmatpush.bf16.msrb.mxu3 %v965_v30  ;;  %v933_v41 = vpack.c.bf16 %v931_v35, %v931_v35 }
 0x444   : > { %1187 = vmatpush.bf16.msra.mxu3 %v1556_v5 }
 0x445   : > { %v1622_v12 = vpop.eup %1621 }
 0x446   : > { %v1624_v32 = vpop.eup %1623  ;;  %v932_v33 = vmul.f32 %v1622_v12, %v1614_v16  ;;  %v936_v34 = vpop.permute.xlu2 %935 }
 0x447   : > { %v858_v36 = vmul.f32 %v1624_v32, %v1616_v17  ;;  %v937_v37 = vrot.slane %v936_v34, 4 }
 0x448   : > { %v934_v38 = vpack.c.bf16 %v932_v33, %v932_v33  ;;  %1188 = vmatpush.bf16.msra.mxu3 %v1555_v8 }
 0x449   : > { %v860_v39 = vpack.c.bf16 %v858_v36, %v858_v36  ;;  %v943_v40 = vsel %vm941_vm11, %v937_v37, 0  ;;  %v1552_v37 = vld [vmem:[%s1838_s16 + $0x18] sm:$0xff] }
 0x44a   : > { %952 = vmatpush.bf16.msrb.mxu2 %v943_v40  ;;  %1480 = vmatmul.msk.bf16.vlgmr.msrb.gmra.mxu3 %vm836_vm13, %v934_v38  ;;  %v1551_v38 = vld [vmem:[%s1838_s16 + $0x10] sm:$0xff]  ;;  %v1549_v40 = vld [vmem:[%s1838_s16] sm:$0xff] }
 0x44b   : > { %1482 = vmatmul.msk.bf16.vlgmr.msra.gmra.mxu1 %vm836_vm13, %v860_v39  ;;  %v1550_v39 = vld [vmem:[%s1838_s16 + $0x8] sm:$0xff] }
 0x44c   : > { %1189 = vmatpush.bf16.msra.mxu3 %v1554_v15 }
 0x44d   : > { %1479 = vmatmul.msk.bf16.vlgmr.msrb.gmra.mxu2 %vm836_vm13, %v933_v41 }
 0x44e   : > { %1108 = vmatpush.bf16.msra.mxu2 %v1548_v0 }
 0x450   : > { %1190 = vmatpush.bf16.msra.mxu3 %v1553_v19 }
 0x452   : > { %1109 = vmatpush.bf16.msra.mxu2 %v1547_v4 }
 0x454   : > { %1191 = vmatpush.bf16.msra.mxu3 %v1552_v37 }
 0x458   : > { %1192 = vmatpush.bf16.msra.mxu3 %v1551_v38 }
 0x45c   : > { %1193 = vmatpush.bf16.msra.mxu3 %v1550_v39 }
 0x460   : > { %1194 = vmatpush.bf16.msra.mxu3 %v1549_v40 }
 0x4ad   : > { %v996_v42 = vpop.f32.mrf.mxu0 }
 0x4b5   : > { %v998_v43 = vpop.f32.mrf.mxu0 }
 0x4c8   : > { %v1016_v44 = vpop.f32.mrf.mxu1 }
 0x4cd   : > { %v976_v45 = vpop.f32.mrf.mxu3 }
 0x4ce   : > { %v1017_v50 = vadd.f32 %v1016_v44, %v976_v45 }
 0x4d0   : > { %v1018_v46 = vpop.f32.mrf.mxu1  ;;  %v954_v47 = vpop.f32.mrf.mxu2  ;;  %v1021_v54 = vadd.f32 %v1017_v50, %v1864_v13 }
 0x4d1   : > { %v997_v48 = vadd.f32 %v996_v42, %v954_v47  ;;  %v1601_v42 = vld [vmem:[%s608_s22] ss:$0 sm:$0xff] }
 0x4d2   : > { %v1027_v55 = vsel %vm658_vm3, %v1021_v54, 0.0 }
 0x4d3   : > { %v1020_v49 = vadd.f32 %v997_v48, %v1860_v11 }
 0x4d5   : > { %v978_v51 = vpop.f32.mrf.mxu3  ;;  %v1024_v52 = vsel %vm658_vm3, %v1020_v49, 0.0 }
 0x4d6   : > { %1025 = vadd.xlane.f32.xlu0 %v1024_v52 }
 0x4d8   : > { %v956_v53 = vpop.f32.mrf.mxu2 }
 0x4de   : > { %1028 = vadd.xlane.f32.xlu0 %v1027_v55 }
 0x549   : > { %v1026_v56 = vpop.xlane.xlu0 %1025 }
 0x54a   : > { %v1030_v57 = vmul.f32 %v1026_v56, %v1868_v21 }
 0x54c   : > { %v1032_v58 = vsub.f32 %v1020_v49, %v1030_v57  ;;  %v1602_v49 = vld [vmem:[%s616_s30] ss:$0 sm:$0xff] }
 0x54e   : > { %v1034_v59 = vmul.f32 %v1032_v58, %v1032_v58 }
 0x550   : > { %v1036_v11 = vsel %vm658_vm3, %v1034_v59, 0.0 }
 0x551   : > { %1037 = vadd.xlane.f32.xlu0 %v1036_v11  ;;  %v1029_v60 = vpop.xlane.xlu0 %1028 }
 0x552   : > { %v1031_v61 = vmul.f32 %v1029_v60, %v1868_v21 }
 0x554   : > { %v1033_v62 = vsub.f32 %v1021_v54, %v1031_v61 }
 0x556   : > { %v1035_v63 = vmul.f32 %v1033_v62, %v1033_v62 }
 0x558   : > { %v1039_v13 = vsel %vm658_vm3, %v1035_v63, 0.0 }
 0x559   : > { %1040 = vadd.xlane.f32.xlu2 %v1039_v13 }
 0x5c4   : > { %v1038_v1 = vpop.xlane.xlu0 %1037 }
 0x5c5   : > { %v1042_v2 = vmul.f32 %v1038_v1, %v1868_v21 }
 0x5c7   : > { %v1044_v3 = vadd.f32 1e-05, %v1042_v2 }
 0x5c9   : > { %1625 = vrsqrt.f32 %v1044_v3  ;;  %vm1052_vm15 = vweird.f32 %v1044_v3 }
 0x5cc   : > { %v1041_v6 = vpop.xlane.xlu2 %1040 }
 0x5cd   : > { %v1043_v7 = vmul.f32 %v1041_v6, %v1868_v21 }
 0x5cf   : > { %v1626_v9 = vpop.eup %1625  ;;  %v1045_v10 = vadd.f32 1e-05, %v1043_v7 }
 0x5d0   : > { %v1047_v14 = vmul.f32 %v1626_v9, %v1044_v3  ;;  %vm1053_vm14 = vweird.f32 %v1626_v9 }
 0x5d1   : > { %1627 = vrsqrt.f32 %v1045_v10  ;;  %vm1054_vm0 = vmor %vm1052_vm15, %vm1053_vm14  ;;  %vm1062_vm2 = vweird.f32 %v1045_v10 }
 0x5d2   : > { %v1048_v16 = vmul.f32 %v1626_v9, %v1047_v14 }
 0x5d4   : > { %v1049_v17 = vmul.f32 0.5, %v1048_v16 }
 0x5d6   : > { %v1050_v20 = vsub.f32 1.5, %v1049_v17 }
 0x5d7   : > { %v1628_v22 = vpop.eup %1627 }
 0x5d8   : > { %v1051_v23 = vmul.f32 %v1626_v9, %v1050_v20  ;;  %v1057_v24 = vmul.f32 %v1628_v22, %v1045_v10  ;;  %vm1063_vm1 = vweird.f32 %v1628_v22 }
 0x5d9   : > { %vm1064_vm4 = vmor %vm1062_vm2, %vm1063_vm1 }
 0x5da   : > { %v1058_v21 = vmul.f32 %v1628_v22, %v1057_v24  ;;  %v1055_v25 = vsel %vm1054_vm0, %v1626_v9, %v1051_v23 }
 0x5db   : > { %v1066_v18 = vmul.f32 %v1055_v25, %v1032_v58 }
 0x5dc   : > { %v1059_v26 = vmul.f32 0.5, %v1058_v21 }
 0x5dd   : > { %v1071_v12 = vmul.f32 %v1599_v28, %v1066_v18 }
 0x5de   : > { %v1060_v27 = vsub.f32 1.5, %v1059_v26 }
 0x5df   : > { %v1076_v34 = vadd.f32 %v1600_v31, %v1071_v12 }
 0x5e0   : > { %v1061_v29 = vmul.f32 %v1628_v22, %v1060_v27 }
 0x5e2   : > { %v1065_v30 = vsel %vm1064_vm4, %v1628_v22, %v1061_v29 }
 0x5e3   : > { %v1067_v32 = vmul.f32 %v1065_v30, %v1033_v62 }
 0x5e5   : > { %v1072_v33 = vmul.f32 %v1599_v28, %v1067_v32 }
 0x5e7   : > { %v1077_v35 = vadd.f32 %v1600_v31, %v1072_v33 }
 0x5e9   : > { %v1078_v36 = vpack.c.bf16 %v1077_v35, %v1076_v34 }
 0x5eb   : > { %1491 = vmatmul.msk.bf16.vlgmr.msra.gmra.mxu2 %vm658_vm3, %v1078_v36 }
 0x66e   : > { %v1111_v41 = vpop.f32.mrf.mxu2 }
 0x66f   : > { %v1112_v43 = vadd.f32 %v1601_v42, %v1111_v41 }
 0x671   : > { %v1116_v46 = vmax.f32 %v1112_v43, 0.0 }
 0x676   : > { %v1113_v44 = vpop.f32.mrf.mxu2 }
 0x677   : > { %v1114_v45 = vadd.f32 %v1601_v42, %v1113_v44 }
 0x679   : > { %v1117_v47 = vmax.f32 %v1114_v45, 0.0 }
 0x67b   : > { %v1118_v48 = vpack.c.bf16 %v1117_v47, %v1116_v46 }
 0x67d   : > { %1195 = vmatmul.bf16.vlgmr.msra.gmra.mxu3 %v1118_v48 }
 0x700   : > { %v1196_v50 = vpop.f32.mrf.mxu3 }
 0x701   : > { %v1197_v51 = vadd.f32 %v1602_v49, %v1196_v50 }
 0x703   : > { %v1201_v52 = vadd.f32 %v1197_v51, %v1076_v34 }
 0x705   : > { %1203 = vst.msk [vmem:[#allocation2] sm:$0xff] %vm658_vm3, %v1201_v52 }
 0x708   : > { %v1198_v53 = vpop.f32.mrf.mxu3 }
 0x709   : > { %v1199_v54 = vadd.f32 %v1602_v49, %v1198_v53  ;;  %1208 = sbr.rel (%p1524_p6) target bundleno = 1979 (0x7bb), region = 84 }
 0x70b   : > { %v1202_v55 = vadd.f32 %v1199_v54, %v1077_v35 }
 0x70d   : > { %1204 = vst.msk [vmem:[#allocation2 + $0x8] sm:$0xff] %vm658_vm3, %v1202_v55 }
 0x70e   : > { %v1558_v56 = vld [vmem:[%s2033_s15 + $0x8] sm:$0xff]  ;;  %v1557_v57 = vld [vmem:[%s2034_s21] sm:$0xff]  ;;  %v1209_v58 = vpack.c.bf16 %v1202_v55, %v1201_v52 }
 0x70f   : > { %1239 = vmatpush.bf16.msra.mxu0 %v1558_v56  ;;  %v1629_v59 = vld [vmem:[%s2035_s23] ss:$0 sm:$0xff] }
 0x713   : > { %1240 = vmatpush.bf16.msra.mxu0 %v1557_v57 }
 0x716   : > { %1533 = vmatmul.msk.bf16.vlgmr.msra.gmra.mxu0 %vm658_vm3, %v1209_v58 }
 0x793   : > { %v1242_v11 = vpop.f32.mrf.mxu0 }
 0x794   : > { %v1243_v60 = vadd.f32 %v1629_v59, %v1242_v11 }
 0x796   : > { %v1534_v61 = vmul.f32 -1.442695, %v1243_v60 }
 0x798   : > { %1630 = vpow2.f32 %v1534_v61 }
 0x79b   : > { %v1244_v62 = vpop.f32.mrf.mxu0 }
 0x79c   : > { %v1245_v63 = vadd.f32 %v1629_v59, %v1244_v62 }
 0x79e   : > { %v1631_v13 = vpop.eup %1630  ;;  %v1535_v0 = vmul.f32 -1.442695, %v1245_v63 }
 0x79f   : > { %v1253_v1 = vadd.f32 1.0, %v1631_v13 }
 0x7a0   : > { %1632 = vpow2.f32 %v1535_v0 }
 0x7a1   : > { %1634 = vrcp.f32 %v1253_v1  ;;  %v1266_v7 = vand.u32 2147483648, %v1253_v1  ;;  %v1264_v9 = vand.u32 2147483647, %v1253_v1  ;;  %vm1260_vm5 = vweird.f32 %v1253_v1 }
 0x7a3   : > { %v1267_v15 = vor.u32 1.1754944e-38, %v1266_v7  ;;  %vm1265_vm7 = vcmp.eq.f32.partialorder %v1264_v9, 8.507059e+37 }
 0x7a6   : > { %v1633_v2 = vpop.eup %1632 }
 0x7a7   : > { %v1635_v3 = vpop.eup %1634  ;;  %v1254_v4 = vadd.f32 1.0, %v1633_v2 }
 0x7a8   : > { %v1256_v5 = vmul.f32 %v1635_v3, %v1253_v1  ;;  %vm1261_vm3 = vweird.f32 %v1635_v3 }
 0x7a9   : > { %1636 = vrcp.f32 %v1254_v4  ;;  %vm1262_vm6 = vmor %vm1260_vm5, %vm1261_vm3  ;;  %v1281_v22 = vand.u32 2147483648, %v1254_v4  ;;  %v1279_v24 = vand.u32 2147483647, %v1254_v4  ;;  %vm1275_vm9 = vweird.f32 %v1254_v4 }
 0x7aa   : > { %v1257_v6 = vsub.f32 1.0, %v1256_v5 }
 0x7ab   : > { %v1282_v25 = vor.u32 1.1754944e-38, %v1281_v22  ;;  %vm1280_vm11 = vcmp.eq.f32.partialorder %v1279_v24, 8.507059e+37 }
 0x7ac   : > { %v1258_v8 = vmul.f32 %v1635_v3, %v1257_v6 }
 0x7ae   : > { %v1259_v10 = vadd.f32 %v1635_v3, %v1258_v8 }
 0x7af   : > { %v1637_v14 = vpop.eup %1636 }
 0x7b0   : > { %v1263_v16 = vsel %vm1262_vm6, %v1635_v3, %v1259_v10  ;;  %v1271_v17 = vmul.f32 %v1637_v14, %v1254_v4  ;;  %vm1276_vm8 = vweird.f32 %v1637_v14 }
 0x7b1   : > { %v1268_v19 = vsel %vm1265_vm7, %v1267_v15, %v1263_v16  ;;  %vm1277_vm10 = vmor %vm1275_vm9, %vm1276_vm8 }
 0x7b2   : > { %1285 = vst [vmem:[#allocation3] sm:$0xff] %v1268_v19  ;;  %v1272_v20 = vsub.f32 1.0, %v1271_v17 }
 0x7b4   : > { %v1273_v23 = vmul.f32 %v1637_v14, %v1272_v20 }
 0x7b6   : > { %v1274_v21 = vadd.f32 %v1637_v14, %v1273_v23 }
 0x7b8   : > { %v1278_v26 = vsel %vm1277_vm10, %v1637_v14, %v1274_v21 }
 0x7b9   : > { %v1283_v27 = vsel %vm1280_vm11, %v1282_v25, %v1278_v26 }
 0x7ba   : > { %1286 = vst [vmem:[#allocation3 + $0x8] sm:$0xff] %v1283_v27 }
 0x7bb PF: > { %s2036_s29 = sld [smem:[#allocation7_spill]]  ;;  %s1699_s14 = smov [#allocation3]  }
 0x7bc   : > { %s2038_s25 = sld [smem:[#allocation11_spill]]  ;;  %s1295_s19 = sshll.u32 %s1699_s14, 4  ;;  %s1296_s19 = int_to_ptr.vmem [resolvable:$true] %s1295_s19 }
 0x7bd   : > { %s1700_s13 = smov 128   ;;  %s1701_s17 = smov 8  }
 0x7c1   : > { %s2037_s12 = sadd.s32 4294967295, %s2036_s29  }
 0x7c2   : > { %p1563_p7 = scmp.eq.s32.totalorder %s2037_s12, 1  ;;  %s1297_s20 = sshll.u32 %s2038_s25, 4  ;;  %s1298_s20 = int_to_ptr.hbm [resolvable:$true] %s1297_s20 }
 0x7c4   : > { %1560 = dma.vmem_to_hbm [thread:$0]  (%p1563_p7), %s1296_s19, 256, %s1298_s20, [#allocation4], %s1700_s13, %s1700_s13, %s1701_s17  }
 0x7c5   : > { %1679 = dma.done.wait (%p1563_p7), [#allocation4], 256  }
 0x7c6   : > { %1681 = vsyncadd (%p1563_p7), [#allocation4], 4294967040 }
 0x7c7 PF: > { %s2039_s22 = sld [smem:[#allocation7_spill]] }
 0x7c8   : > { %s2040_s29 = sld [smem:[#allocation6_spill]] }
 0x7c9   : > { %s2041_s30 = sld [smem:[#allocation8_spill]] }
 0x7cd   : > { %s25_s15 = sadd.s32 1, %s2039_s22  }
 0x7ce   : > { %p22_p8 = scmp.ge.s32.totalorder %s25_s15, 4  }
 0x7d0   :  { %24 = sbr.rel (!%p22_p8) target bundleno = 6 (0x6), region = 139 }
 0x7d5   :  { %1314 = vsyncpa [#allocation4], 1 }
 0x7d6   :  { %1316 = vsyncpa [#allocation4 + $0x1], 1 }

</bundles_post_ra>
